<compile_context>
chip_gen: v5e
topology: v5e:2x2
jax: 0.10.0
libtpu: 0.0.40
codegen_flags: <defaults>
</compile_context>

<pallas_src>
import functools

import jax
import jax.numpy as jnp
from jax import lax
from jax.experimental import pallas as pl
from jax.experimental.pallas import tpu as pltpu


def _round_up(x, m):
    return (x + m - 1) // m * m


def _block_diag(mats, dtype):
    rows = sum(m.shape[0] for m in mats)
    cols = sum(m.shape[1] for m in mats)
    out = jnp.zeros((rows, cols), dtype)
    r = c = 0
    for m in mats:
        out = out.at[r:r + m.shape[0], c:c + m.shape[1]].set(m.astype(dtype))
        r += m.shape[0]
        c += m.shape[1]
    return out


# --------------------------------------------------------------------------------------
# Kernel
# --------------------------------------------------------------------------------------
def _stacked_feature_block_kernel(n_hidden, pad_cols, mm_precision, x_ref, *refs):
    """refs = (w0, b0, ..., w_{L-1}, b_{L-1}, w_out, b_out, slab_ref)."""
    slab_ref = refs[-1]
    params = refs[:-1]

    # Activations stay f32; weights are used in their own dtype (no forced truncation of
    # activations when weights are bf16).  Accumulation is always f32 via
    # preferred_element_type; bias-add / ReLU epilogue is f32 once per layer.
    h = x_ref[...].astype(jnp.float32)
    for layer in range(n_hidden):
        w = params[2 * layer][...]
        b = params[2 * layer + 1][...].astype(jnp.float32)          # (1, out_dim)
        acc = jnp.dot(h, w, preferred_element_type=jnp.float32, precision=mm_precision)
        h = jnp.maximum(acc + b, 0.0)                                # nn.ReLU()

    # Output projection (block-diagonal over stacked FeatureBlocks).
    w_o = params[-2][...]
    b_o = params[-1][...].astype(jnp.float32)                        # (1, o_tot)
    y = jnp.dot(h, w_o, preferred_element_type=jnp.float32, precision=mm_precision) + b_o

    # `h` is passed through to the slab directly (bit-exact, no identity matmul).  The slab
    # is lane-padded to a multiple of 128 so the HBM writeback is one unmasked full-width
    # store per tile.
    pieces = [h, y]
    if pad_cols:
        pieces.append(jnp.zeros((h.shape[0], pad_cols), jnp.float32))
    slab_ref[...] = jnp.concatenate(pieces, axis=-1).astype(slab_ref.dtype)


# --------------------------------------------------------------------------------------
# Parameter preparation (done ONCE, reused across forward calls)
# --------------------------------------------------------------------------------------
def prepare_feature_blocks(blocks):
    """blocks: list of (hidden_weights, hidden_biases, out_w, out_b), one per FeatureBlock.

    All blocks must have the same number of hidden layers.  Returns (params, meta) where
    params is the flat list passed to the kernel and meta describes the per-block segments.
    Build this once at setup time -- do NOT rebuild per forward call.
    """
    n_hidden = len(blocks[0][0])
    assert all(len(b[0]) == n_hidden for b in blocks), "blocks must share hidden depth"
    w_dtype = blocks[0][2].dtype

    params = []
    for layer in range(n_hidden):
        ws = [b[0][layer] for b in blocks]
        bs = [b[1][layer] for b in blocks]
        params.append(_block_diag(ws, w_dtype))
        params.append(jnp.concatenate([x.astype(w_dtype) for x in bs]).reshape(1, -1))
    params.append(_block_diag([b[2] for b in blocks], w_dtype))
    params.append(jnp.concatenate([b[3].astype(w_dtype) for b in blocks]).reshape(1, -1))

    in_sizes = tuple(b[0][0].shape[0] for b in blocks)
    hid_sizes = tuple(b[0][-1].shape[1] for b in blocks)
    out_sizes = tuple(b[2].shape[1] for b in blocks)
    h_tot, o_tot = sum(hid_sizes), sum(out_sizes)
    meta = dict(
        n_hidden=n_hidden,
        in_sizes=in_sizes, hid_sizes=hid_sizes, out_sizes=out_sizes,
        h_tot=h_tot, o_tot=o_tot,
        n_pad=_round_up(h_tot + o_tot, 128),
    )
    return params, meta


# --------------------------------------------------------------------------------------
# Forward
# --------------------------------------------------------------------------------------
def stacked_feature_blocks_forward(x, params, meta, *, block_m=None, mm_precision=None):
    """x: (B, sum(in_sizes)) -- per-block inputs concatenated along the last dim.
    Returns a list of (new_hidden_f, block_output_f), one pair per stacked FeatureBlock."""
    B, d_in = x.shape
    assert d_in == sum(meta["in_sizes"])
    n_hidden = meta["n_hidden"]
    n_pad = meta["n_pad"]

    if mm_precision is None:
        # fp32-fidelity path for f32 weights; bf16 weights take the native single-pass MXU.
        mm_precision = (lax.Precision.HIGHEST
                        if params[0].dtype == jnp.float32 else lax.Precision.DEFAULT)

    # One grid step unless the batch is large: serial grid steps cost ~0.35us each on a
    # single-TC chip and there is nothing meaningful to pipeline at this size.
    # TODO(synk): on v7x verify the batch axis actually shards across both TensorCores
    # (pass block_m <= B//2); if plain "parallel" does not split, use pltpu.CORE_PARALLEL.
    if block_m is None:
        block_m = 512
    block_m = min(_round_up(block_m, 8), _round_up(B, 8))
    grid_m = pl.cdiv(B, block_m)
    b_padded = grid_m * block_m
    x_in = x if b_padded == B else jnp.pad(x, ((0, b_padded - B), (0, 0)))

    in_specs = [pl.BlockSpec((block_m, d_in), lambda i: (i, 0))]
    # Weights/biases: full resident blocks with a constant index_map (stay in VMEM across
    # grid steps; a few KB each, far under any VMEM limit).
    for p in params:
        in_specs.append(pl.BlockSpec(p.shape, lambda i: (0, 0)))

    pad_cols = n_pad - meta["h_tot"] - meta["o_tot"]
    kernel = functools.partial(_stacked_feature_block_kernel, n_hidden, pad_cols, mm_precision)

    slab = pl.pallas_call(
        kernel,
        out_shape=jax.ShapeDtypeStruct((b_padded, n_pad), x.dtype),
        grid=(grid_m,),
        in_specs=in_specs,
        out_specs=pl.BlockSpec((block_m, n_pad), lambda i: (i, 0)),
        compiler_params=pltpu.CompilerParams(
            dimension_semantics=("parallel",),
        ),
    )(x_in, *params)

    outs = []
    h_off, y_off = 0, meta["h_tot"]
    for hs, os_ in zip(meta["hid_sizes"], meta["out_sizes"]):
        new_hidden = slab[:B, h_off:h_off + hs]
        block_output = slab[:B, y_off:y_off + os_]
        outs.append((new_hidden, block_output))
        h_off += hs
        y_off += os_
    return outs


def feature_block_forward(x, hidden_weights, hidden_biases, out_w, out_b, *,
                          block_m=None, mm_precision=None):
    """Single FeatureBlock.forward -> (new_hidden, block_output).

    Note: for repeated calls, call prepare_feature_blocks once and reuse (params, meta)."""
    params, meta = prepare_feature_blocks([(hidden_weights, hidden_biases, out_w, out_b)])
    (result,) = stacked_feature_blocks_forward(x, params, meta,
                                               block_m=block_m, mm_precision=mm_precision)
    return result


# --------------------------------------------------------------------------------------
# Reference + demo
# --------------------------------------------------------------------------------------
def _init_linear(key, in_dim, out_dim, dtype=jnp.float32):
    """uniform(-1/sqrt(in_dim), 1/sqrt(in_dim)) like PyTorch's nn.Linear default."""
    kw, kb = jax.random.split(key)
    bound = 1.0 / (in_dim ** 0.5)
    w = jax.random.uniform(kw, (in_dim, out_dim), dtype, minval=-bound, maxval=bound)
    b = jax.random.uniform(kb, (out_dim,), dtype, minval=-bound, maxval=bound)
    return w, b


def _reference_forward(x, hidden_weights, hidden_biases, out_w, out_b):
    h = x.astype(jnp.float32)
    for w, b in zip(hidden_weights, hidden_biases):
        h = jnp.maximum(
            jnp.dot(h, w.astype(jnp.float32), precision=lax.Precision.HIGHEST)
            + b.astype(jnp.float32), 0.0)
    y = (jnp.dot(h, out_w.astype(jnp.float32), precision=lax.Precision.HIGHEST)
         + out_b.astype(jnp.float32))
    return h, y


if __name__ == "__main__":
    # FeatureBlock(input_size=16, hidden_dims=[32, 32], output_size=24)
    batch = 64
    input_size = 16
    hidden_dims = [32, 32]
    output_size = 24
    num_blocks = 4          # demonstrate stacking several FeatureBlocks into one pallas_call

    key = jax.random.PRNGKey(0)
    keys = jax.random.split(key, 2 * num_blocks)

    blocks, xs = [], []
    dims = [input_size] + hidden_dims
    for f in range(num_blocks):
        kp, kx = keys[2 * f], keys[2 * f + 1]
        layer_keys = jax.random.split(kp, len(hidden_dims) + 1)
        hw, hb = [], []
        for i, (din, dout) in enumerate(zip(dims[:-1], dims[1:])):
            w, b = _init_linear(layer_keys[i], din, dout)
            hw.append(w)
            hb.append(b)
        ow, ob = _init_linear(layer_keys[-1], hidden_dims[-1], output_size)
        blocks.append((hw, hb, ow, ob))
        xs.append(jax.random.normal(kx, (batch, input_size), dtype=jnp.float32))

    # --- 1) Single FeatureBlock (matches the PyTorch module 1:1) -----------------------
    new_hidden, block_output = feature_block_forward(xs[0], *blocks[0])
    jax.block_until_ready((new_hidden, block_output))
    ref_h, ref_y = _reference_forward(xs[0], *blocks[0])
    assert new_hidden.shape == (batch, hidden_dims[-1])
    assert block_output.shape == (batch, output_size)
    assert jnp.allclose(new_hidden, ref_h, atol=2e-5, rtol=2e-5)
    assert jnp.allclose(block_output, ref_y, atol=2e-5, rtol=2e-5)

    # --- 2) Many FeatureBlocks fused into ONE pallas_call (block-diagonal weights) -----
    params, meta = prepare_feature_blocks(blocks)          # built once, reused per call
    x_cat = jnp.concatenate(xs, axis=1)                    # (B, num_blocks * input_size)
    outs = stacked_feature_blocks_forward(x_cat, params, meta)
    jax.block_until_ready(outs)
    for f in range(num_blocks):
        ref_h, ref_y = _reference_forward(xs[f], *blocks[f])
        nh, bo = outs[f]
        assert nh.shape == (batch, hidden_dims[-1])
        assert bo.shape == (batch, output_size)
        assert jnp.allclose(nh, ref_h, atol=2e-5, rtol=2e-5)
        assert jnp.allclose(bo, ref_y, atol=2e-5, rtol=2e-5)

    print("KERNEL_OK")
</pallas_src>

<mosaic_0001>
module attributes {stable_mosaic.version = 11 : i64} {
  func.func @_stacked_feature_block_kernel(%arg0: i32, %arg1: memref<64x16xf32, #tpu.memory_space<vmem>>, %arg2: memref<16x32xf32, #tpu.memory_space<vmem>>, %arg3: memref<1x32xf32, #tpu.memory_space<vmem>>, %arg4: memref<32x32xf32, #tpu.memory_space<vmem>>, %arg5: memref<1x32xf32, #tpu.memory_space<vmem>>, %arg6: memref<32x24xf32, #tpu.memory_space<vmem>>, %arg7: memref<1x24xf32, #tpu.memory_space<vmem>>, %arg8: memref<64x128xf32, #tpu.memory_space<vmem>>) attributes {dimension_semantics = [#tpu.dimension_semantics<parallel>], iteration_bounds = array<i64: 1>, scalar_prefetch = 0 : i64, scratch_operands = 0 : i64, tpu.core_type = #tpu.core_type<tc>, window_params = [{transform_indices = @transform_0, window_bounds = array<i64: 64, 16>}, {pipeline_mode = #tpu.pipeline_mode<synchronous>, transform_indices = @transform_1, window_bounds = array<i64: 16, 32>}, {pipeline_mode = #tpu.pipeline_mode<synchronous>, transform_indices = @transform_2, window_bounds = array<i64: 1, 32>}, {pipeline_mode = #tpu.pipeline_mode<synchronous>, transform_indices = @transform_3, window_bounds = array<i64: 32, 32>}, {pipeline_mode = #tpu.pipeline_mode<synchronous>, transform_indices = @transform_4, window_bounds = array<i64: 1, 32>}, {pipeline_mode = #tpu.pipeline_mode<synchronous>, transform_indices = @transform_5, window_bounds = array<i64: 32, 24>}, {pipeline_mode = #tpu.pipeline_mode<synchronous>, transform_indices = @transform_6, window_bounds = array<i64: 1, 24>}, {transform_indices = @transform_7, window_bounds = array<i64: 64, 128>}]} {
    %c0 = arith.constant 0 : index
    %c0_0 = arith.constant 0 : index
    %0 = vector.load %arg1[%c0, %c0_0] : memref<64x16xf32, #tpu.memory_space<vmem>>, vector<64x16xf32>
    %c0_1 = arith.constant 0 : index
    %c0_2 = arith.constant 0 : index
    %1 = vector.load %arg2[%c0_1, %c0_2] : memref<16x32xf32, #tpu.memory_space<vmem>>, vector<16x32xf32>
    %c0_3 = arith.constant 0 : index
    %c0_4 = arith.constant 0 : index
    %2 = vector.load %arg3[%c0_3, %c0_4] : memref<1x32xf32, #tpu.memory_space<vmem>>, vector<1x32xf32>
    %cst = arith.constant dense<0.000000e+00> : vector<64x32xf32>
    %3 = tpu.matmul %0, %1, %cst {dimension_numbers = #tpu.dot_dimension_numbers<[1], [0], [0], [1], [0, 0, 1, 1], [], []>, precision = #tpu.contract_precision<fp32>} : vector<64x16xf32>, vector<16x32xf32>, vector<64x32xf32> -> vector<64x32xf32>
    %4 = vector.broadcast %2 : vector<1x32xf32> to vector<64x32xf32>
    %5 = arith.addf %3, %4 : vector<64x32xf32>
    %cst_5 = arith.constant 0.000000e+00 : f32
    %6 = vector.broadcast %cst_5 : f32 to vector<64x32xf32>
    %7 = arith.maximumf %5, %6 : vector<64x32xf32>
    %c0_6 = arith.constant 0 : index
    %c0_7 = arith.constant 0 : index
    %8 = vector.load %arg4[%c0_6, %c0_7] : memref<32x32xf32, #tpu.memory_space<vmem>>, vector<32x32xf32>
    %c0_8 = arith.constant 0 : index
    %c0_9 = arith.constant 0 : index
    %9 = vector.load %arg5[%c0_8, %c0_9] : memref<1x32xf32, #tpu.memory_space<vmem>>, vector<1x32xf32>
    %cst_10 = arith.constant dense<0.000000e+00> : vector<64x32xf32>
    %10 = tpu.matmul %7, %8, %cst_10 {dimension_numbers = #tpu.dot_dimension_numbers<[1], [0], [0], [1], [0, 0, 1, 1], [], []>, precision = #tpu.contract_precision<fp32>} : vector<64x32xf32>, vector<32x32xf32>, vector<64x32xf32> -> vector<64x32xf32>
    %11 = vector.broadcast %9 : vector<1x32xf32> to vector<64x32xf32>
    %12 = arith.addf %10, %11 : vector<64x32xf32>
    %cst_11 = arith.constant 0.000000e+00 : f32
    %13 = vector.broadcast %cst_11 : f32 to vector<64x32xf32>
    %14 = arith.maximumf %12, %13 : vector<64x32xf32>
    %c0_12 = arith.constant 0 : index
    %c0_13 = arith.constant 0 : index
    %15 = vector.load %arg6[%c0_12, %c0_13] : memref<32x24xf32, #tpu.memory_space<vmem>>, vector<32x24xf32>
    %c0_14 = arith.constant 0 : index
    %c0_15 = arith.constant 0 : index
    %16 = vector.load %arg7[%c0_14, %c0_15] : memref<1x24xf32, #tpu.memory_space<vmem>>, vector<1x24xf32>
    %cst_16 = arith.constant dense<0.000000e+00> : vector<64x24xf32>
    %17 = tpu.matmul %14, %15, %cst_16 {dimension_numbers = #tpu.dot_dimension_numbers<[1], [0], [0], [1], [0, 0, 1, 1], [], []>, precision = #tpu.contract_precision<fp32>} : vector<64x32xf32>, vector<32x24xf32>, vector<64x24xf32> -> vector<64x24xf32>
    %18 = vector.broadcast %16 : vector<1x24xf32> to vector<64x24xf32>
    %19 = arith.addf %17, %18 : vector<64x24xf32>
    %cst_17 = arith.constant 0.000000e+00 : f32
    %20 = vector.broadcast %cst_17 : f32 to vector<64x72xf32>
    %21 = tpu.concatenate %14, %19, %20 in 1 : vector<64x32xf32>, vector<64x24xf32>, vector<64x72xf32> -> vector<64x128xf32>
    %c0_18 = arith.constant 0 : index
    %c0_19 = arith.constant 0 : index
    %22 = vector.load %arg8[%c0_18, %c0_19] : memref<64x128xf32, #tpu.memory_space<vmem>>, vector<64x128xf32>
    tpu.vector_store %arg8[%c0_18, %c0_19], %21 {strides = array<i32>} : memref<64x128xf32, #tpu.memory_space<vmem>>, vector<64x128xf32>,
    return
  }
  func.func @transform_0(%arg0: i32) -> (i32, i32) {
    %c0_i32 = arith.constant 0 : i32
    %c0_i32_0 = arith.constant 0 : i32
    return %arg0, %c0_i32 : i32, i32
  }
  func.func @transform_1(%arg0: i32) -> (i32, i32) {
    %c0_i32 = arith.constant 0 : i32
    %c0_i32_0 = arith.constant 0 : i32
    %c0_i32_1 = arith.constant 0 : i32
    return %c0_i32, %c0_i32_0 : i32, i32
  }
  func.func @transform_2(%arg0: i32) -> (i32, i32) {
    %c0_i32 = arith.constant 0 : i32
    %c0_i32_0 = arith.constant 0 : i32
    %c0_i32_1 = arith.constant 0 : i32
    return %c0_i32, %c0_i32_0 : i32, i32
  }
  func.func @transform_3(%arg0: i32) -> (i32, i32) {
    %c0_i32 = arith.constant 0 : i32
    %c0_i32_0 = arith.constant 0 : i32
    %c0_i32_1 = arith.constant 0 : i32
    return %c0_i32, %c0_i32_0 : i32, i32
  }
  func.func @transform_4(%arg0: i32) -> (i32, i32) {
    %c0_i32 = arith.constant 0 : i32
    %c0_i32_0 = arith.constant 0 : i32
    %c0_i32_1 = arith.constant 0 : i32
    return %c0_i32, %c0_i32_0 : i32, i32
  }
  func.func @transform_5(%arg0: i32) -> (i32, i32) {
    %c0_i32 = arith.constant 0 : i32
    %c0_i32_0 = arith.constant 0 : i32
    %c0_i32_1 = arith.constant 0 : i32
    return %c0_i32, %c0_i32_0 : i32, i32
  }
  func.func @transform_6(%arg0: i32) -> (i32, i32) {
    %c0_i32 = arith.constant 0 : i32
    %c0_i32_0 = arith.constant 0 : i32
    %c0_i32_1 = arith.constant 0 : i32
    return %c0_i32, %c0_i32_0 : i32, i32
  }
  func.func @transform_7(%arg0: i32) -> (i32, i32) {
    %c0_i32 = arith.constant 0 : i32
    %c0_i32_0 = arith.constant 0 : i32
    return %arg0, %c0_i32 : i32, i32
  }
}

</mosaic_0001>

<bundles_post_ra>
// kernel: tpu_custom_call.1
= control target key start
LH: loop header
LB: loop body
LE: loop exit
PB: predicated region body
PF: predicated region fallthrough
CT: control target
= control target key end

     0   :  { %vm41_vm0 = vcmask 130048   ;;  %s1912_s0 = inlined_call_operand.vmem [shape: f32[64,16], index: 0, kind: input, shape index: {}]   ;;  %s1913_s1 = inlined_call_operand.vmem [shape: f32[16,32], index: 1, kind: input, shape index: {}]   ;;  %s1914_s2 = inlined_call_operand.vmem [shape: f32[1,32], index: 2, kind: input, shape index: {}]   ;;  %s1915_s3 = inlined_call_operand.vmem [shape: f32[32,32], index: 3, kind: input, shape index: {}]   ;;  %s1916_s4 = inlined_call_operand.vmem [shape: f32[1,32], index: 4, kind: input, shape index: {}]   ;;  %s1917_s5 = inlined_call_operand.vmem [shape: f32[32,24], index: 5, kind: input, shape index: {}]   ;;  %s1918_s6 = inlined_call_operand.vmem [shape: f32[1,24], index: 6, kind: input, shape index: {}]   ;;  %s1919_s7 = inlined_call_operand.hbm [shape: f32[64,128], index: 7, kind: output, shape index: {}]  }
   0x1   :  { %v36_v0 = vld [vmem:[%s1913_s1 + $0x8] sm:$0xff]  ;;  %v35_v1 = vld [vmem:[%s1913_s1] sm:$0xff]  ;;  %v33_v8 = vld [vmem:[%s1912_s0 + $0x30] sm:$0xff] }
   0x2   :  { %v31_v2 = vld [vmem:[%s1912_s0 + $0x20] sm:$0xff]  ;;  %v1492_v3 = vand.u32 4294901760, %v36_v0  ;;  %v1494_v4 = vand.u32 4294901760, %v35_v1  ;;  %v32_v6 = vld [vmem:[%s1912_s0 + $0x28] sm:$0xff]  ;;  %v61_v18 = vsel %vm41_vm0, %v33_v8, 0 }
   0x3   :  { %v55_v5 = vsel %vm41_vm0, %v31_v2, 0  ;;  %v27_v7 = vld [vmem:[%s1912_s0] sm:$0xff]  ;;  %v58_v10 = vsel %vm41_vm0, %v32_v6, 0  ;;  %v28_v12 = vld [vmem:[%s1912_s0 + $0x8] sm:$0xff] }
   0x4   :  { %v1506_v9 = vand.u32 4294901760, %v55_v5  ;;  %v43_v11 = vsel %vm41_vm0, %v27_v7, 0  ;;  %1402 = vmatpush.msra.mxu2 %v1492_v3  ;;  %v164_v13 = vsub.f32 %v36_v0, %v1492_v3  ;;  %v170_v14 = vsub.f32 %v35_v1, %v1494_v4  ;;  %81 = vmatpush.msra.mxu0 %v1492_v3 }
   0x5   :  { %v1517_v15 = vand.u32 4294901760, %v58_v10  ;;  %v1519_v16 = vand.u32 4294901760, %v43_v11  ;;  %v46_v19 = vsel %vm41_vm0, %v28_v12, 0 }
   0x6   :  { %v1522_v17 = vsub.f32 %v55_v5, %v1506_v9  ;;  %1403 = vmatpush.msra.mxu2 %v1494_v4  ;;  %v165_v20 = vand.u32 4294901760, %v164_v13  ;;  %v171_v21 = vand.u32 4294901760, %v170_v14  ;;  %83 = vmatpush.msra.mxu0 %v1494_v4 }
   0x7   :  { %v1528_v22 = vsub.f32 %v58_v10, %v1517_v15  ;;  %v1532_v23 = vsub.f32 %v43_v11, %v1519_v16 }
   0x8   :  { %12 = vsyncpa [#allocation3], 0  ;;  %v118_v24 = vand.u32 4294901760, %v1522_v17  ;;  %224 = vmatpush.msrb.mxu2 %v164_v13  ;;  %v1535_v25 = vand.u32 4294901760, %v46_v19  ;;  %v166_v26 = vsub.f32 %v164_v13, %v165_v20  ;;  %v172_v27 = vsub.f32 %v170_v14, %v171_v21  ;;  %353 = vmatpush.msrb.mxu0 %v165_v20  ;;  %v29_v33 = vld [vmem:[%s1912_s0 + $0x10] sm:$0xff]  ;;  %v34_v39 = vld [vmem:[%s1912_s0 + $0x38] sm:$0xff] }
   0x9   :  { %v86_v28 = vand.u32 4294901760, %v1532_v23  ;;  %v126_v30 = vand.u32 4294901760, %v1528_v22  ;;  %v1542_v31 = vand.u32 4294901760, %v61_v18  ;;  %v49_v41 = vsel %vm41_vm0, %v29_v33, 0  ;;  %v30_v42 = vld [vmem:[%s1912_s0 + $0x18] sm:$0xff]  ;;  %s1440_s13 = smov [#allocation2]  }
   0xa   :  { %v119_v29 = vsub.f32 %v1522_v17, %v118_v24  ;;  %227 = vmatpush.msrb.mxu2 %v170_v14  ;;  %v1545_v32 = vsub.f32 %v46_v19, %v1535_v25  ;;  %v167_v34 = vand.u32 4294901760, %v166_v26  ;;  %v173_v35 = vand.u32 4294901760, %v172_v27  ;;  %357 = vmatpush.msrb.mxu0 %v171_v21  ;;  %v450_v26 = vld [vmem:[%s1915_s3] sm:$0xff]  ;;  %s1388_s14 = sshll.u32 %s1440_s13, 4  ;;  %s1390_s17 = sshll.u32 %s1919_s7, 4  ;;  %s1389_s14 = int_to_ptr.vmem [resolvable:$true] %s1388_s14  ;;  %s1391_s17 = int_to_ptr.hbm [resolvable:$true] %s1390_s17 }
   0xb   :  { %v87_v36 = vsub.f32 %v1532_v23, %v86_v28  ;;  %v127_v43 = vsub.f32 %v1528_v22, %v126_v30  ;;  %v1565_v44 = vsub.f32 %v61_v18, %v1542_v31  ;;  %v100_v45 = vand.u32 4294901760, %v49_v41  ;;  %s1441_s18 = smov 128   ;;  %s1442_s19 = smov 8  }
   0xc   :  { %v120_v37 = vand.u32 4294901760, %v119_v29  ;;  %v94_v38 = vand.u32 4294901760, %v1545_v32  ;;  %1404 = vmatpush.msra.mxu3 %v167_v34  ;;  %168 = vmatpush.msra.mxu1 %v167_v34  ;;  %v64_v47 = vsel %vm41_vm0, %v34_v39, 0  ;;  %v52_v49 = vsel %vm41_vm0, %v30_v42, 0 }
   0xd   :  { %v88_v40 = vand.u32 4294901760, %v87_v36  ;;  %v101_v48 = vsub.f32 %v49_v41, %v100_v45  ;;  %v128_v50 = vand.u32 4294901760, %v127_v43  ;;  %v134_v51 = vand.u32 4294901760, %v1565_v44  ;;  %v1647_v43 = vld [vmem:[%s1914_s2] ss:$0 sm:$0xff] }
   0xe   :  { %121 = vmatmul.f32.vlgmr.msra.gmra.mxu2 %v120_v37  ;;  %1405 = vmatpush.msra.mxu3 %v173_v35  ;;  %v95_v46 = vsub.f32 %v1545_v32, %v94_v38  ;;  %v1575_v52 = vand.u32 4294901760, %v64_v47  ;;  %v108_v55 = vand.u32 4294901760, %v52_v49  ;;  %vm458_vm1 = vcmask 261120  }
   0xf   :  { %89 = vmatmul.f32.vlgmr.msra.gmra.mxu0 %v88_v40  ;;  %192 = vmatmul.f32.vlgmr.msra.gmra.mxu3 %v1506_v9  ;;  %v102_v54 = vand.u32 4294901760, %v101_v48  ;;  %v135_v56 = vsub.f32 %v1565_v44, %v134_v51  ;;  %vm1367_vm2 = vcmask 457728  }
  0x10   :  { %174 = vmatpush.msra.mxu1 %v173_v35  ;;  %284 = vmatpush.msrb.mxu3 %v1492_v3  ;;  %v96_v53 = vand.u32 4294901760, %v95_v46  ;;  %v141_v57 = vsub.f32 %v64_v47, %v1575_v52  ;;  %v109_v59 = vsub.f32 %v52_v49, %v108_v55 }
  0x11   :  { %176 = vmatmul.f32.vlgmr.msra.gmra.mxu1 %v1519_v16  ;;  %v103_v58 = vsub.f32 %v101_v48, %v102_v54  ;;  %v136_v60 = vand.u32 4294901760, %v135_v56 }
  0x12   :  { %406 = vmatpush.msrb.mxu1 %v1492_v3  ;;  %286 = vmatpush.msrb.mxu3 %v1494_v4  ;;  %v142_v61 = vand.u32 4294901760, %v141_v57  ;;  %v110_v63 = vand.u32 4294901760, %v109_v59 }
  0x13   :  { %v104_v62 = vand.u32 4294901760, %v103_v58 }
  0x14   :  { %408 = vmatpush.msrb.mxu1 %v1494_v4  ;;  %v143_v0 = vsub.f32 %v141_v57, %v142_v61  ;;  %v111_v1 = vsub.f32 %v109_v59, %v110_v63  ;;  %v453_v4 = vld [vmem:[%s1915_s3 + $0x18] sm:$0xff] }
  0x15   :  { %v1598_v5 = vand.u32 4294901760, %v453_v4 }
  0x16   :  { %129 = vmatmul.f32.gmra.mxu2 %v128_v50  ;;  %v144_v2 = vand.u32 4294901760, %v143_v0  ;;  %v112_v3 = vand.u32 4294901760, %v111_v1 }
  0x17   :  { %97 = vmatmul.f32.gmra.mxu0 %v96_v53  ;;  %196 = vmatmul.f32.gmra.mxu3 %v1517_v15  ;;  %v581_v6 = vsub.f32 %v453_v4, %v1598_v5 }
  0x18   :  { %496 = vmatpush.msra.mxu2 %v1598_v5  ;;  %715 = vmatpush.msra.mxu1 %v1598_v5 }
  0x19   :  { %180 = vmatmul.f32.gmra.mxu1 %v1535_v25  ;;  %v582_v7 = vand.u32 4294901760, %v581_v6  ;;  %651 = vmatpush.msra.mxu0 %v581_v6 }
  0x1b   :  { %v583_v8 = vsub.f32 %v581_v6, %v582_v7 }
  0x1d   :  { %v584_v10 = vand.u32 4294901760, %v583_v8 }
  0x1e   :  { %137 = vmatmul.f32.gmra.mxu2 %v136_v60 }
  0x1f   :  { %105 = vmatmul.f32.gmra.mxu0 %v104_v62  ;;  %200 = vmatmul.f32.gmra.mxu3 %v1542_v31 }
  0x20   :  { %585 = vmatpush.msra.mxu3 %v584_v10 }
  0x21   :  { %184 = vmatmul.f32.gmra.mxu1 %v100_v45 }
  0x26   :  { %145 = vmatmul.f32.gmra.mxu2 %v144_v2 }
  0x27   :  { %113 = vmatmul.f32.gmra.mxu0 %v112_v3  ;;  %204 = vmatmul.f32.gmra.mxu3 %v1575_v52 }
  0x29   :  { %188 = vmatmul.f32.gmra.mxu1 %v108_v55 }
  0x2e   :  { %230 = vmatmul.f32.vlgmr.msrb.gmra.mxu2 %v1532_v23 }
  0x2f   :  { %359 = vmatmul.f32.vlgmr.msrb.gmra.mxu0 %v1519_v16  ;;  %290 = vmatmul.f32.vlgmr.msrb.gmra.mxu3 %v86_v28  ;;  %v501_v28 = vand.u32 4294901760, %v450_v26 }
  0x31   :  { %410 = vmatmul.f32.vlgmr.msrb.gmra.mxu1 %v1519_v16  ;;  %v451_v16 = vld [vmem:[%s1915_s3 + $0x8] sm:$0xff] }
  0x36   :  { %235 = vmatmul.f32.gmra.mxu2 %v1545_v32 }
  0x37   :  { %363 = vmatmul.f32.gmra.mxu0 %v1535_v25  ;;  %296 = vmatmul.f32.gmra.mxu3 %v94_v38 }
  0x39   :  { %414 = vmatmul.f32.gmra.mxu1 %v1535_v25 }
  0x3e   :  { %240 = vmatmul.f32.gmra.mxu2 %v101_v48 }
  0x3f   :  { %367 = vmatmul.f32.gmra.mxu0 %v100_v45  ;;  %302 = vmatmul.f32.gmra.mxu3 %v102_v54 }
  0x41   :  { %418 = vmatmul.f32.gmra.mxu1 %v100_v45 }
  0x46   :  { %245 = vmatmul.f32.gmra.mxu2 %v109_v59 }
  0x47   :  { %371 = vmatmul.f32.gmra.mxu0 %v108_v55  ;;  %308 = vmatmul.f32.gmra.mxu3 %v110_v63 }
  0x49   :  { %422 = vmatmul.f32.gmra.mxu1 %v108_v55 }
  0x4e   :  { %250 = vmatmul.f32.gmra.mxu2 %v1522_v17  ;;  %v499_v17 = vand.u32 4294901760, %v451_v16 }
  0x4f   :  { %375 = vmatmul.f32.gmra.mxu0 %v1506_v9  ;;  %314 = vmatmul.f32.gmra.mxu3 %v118_v24 }
  0x50   :  { %v593_v18 = vsub.f32 %v451_v16, %v499_v17 }
  0x51   :  { %426 = vmatmul.f32.gmra.mxu1 %v1506_v9  ;;  %v452_v9 = vld [vmem:[%s1915_s3 + $0x10] sm:$0xff] }
  0x52   :  { %v497_v11 = vand.u32 4294901760, %v452_v9  ;;  %v594_v20 = vand.u32 4294901760, %v593_v18 }
  0x54   :  { %498 = vmatpush.msra.mxu2 %v497_v11  ;;  %717 = vmatpush.msra.mxu1 %v497_v11  ;;  %v587_v12 = vsub.f32 %v452_v9, %v497_v11 }
  0x56   :  { %255 = vmatmul.f32.gmra.mxu2 %v1528_v22  ;;  %v588_v13 = vand.u32 4294901760, %v587_v12  ;;  %654 = vmatpush.msra.mxu0 %v587_v12  ;;  %v595_v22 = vsub.f32 %v593_v18, %v594_v20 }
  0x57   :  { %379 = vmatmul.f32.gmra.mxu0 %v1517_v15  ;;  %320 = vmatmul.f32.gmra.mxu3 %v126_v30  ;;  %v599_v30 = vsub.f32 %v450_v26, %v501_v28 }
  0x58   :  { %v589_v14 = vsub.f32 %v587_v12, %v588_v13  ;;  %500 = vmatpush.msra.mxu2 %v499_v17  ;;  %719 = vmatpush.msra.mxu1 %v499_v17  ;;  %v596_v23 = vand.u32 4294901760, %v595_v22 }
  0x59   :  { %430 = vmatmul.f32.gmra.mxu1 %v1517_v15  ;;  %657 = vmatpush.msra.mxu0 %v593_v18 }
  0x5a   :  { %v590_v15 = vand.u32 4294901760, %v589_v14  ;;  %502 = vmatpush.msra.mxu2 %v501_v28  ;;  %721 = vmatpush.msra.mxu1 %v501_v28 }
  0x5b   :  { %660 = vmatpush.msra.mxu0 %v599_v30 }
  0x5c   :  { %591 = vmatpush.msra.mxu3 %v590_v15  ;;  %786 = vmatpush.msrb.mxu2 %v582_v7 }
  0x5e   :  { %260 = vmatmul.f32.gmra.mxu2 %v1565_v44  ;;  %597 = vmatpush.msra.mxu3 %v596_v23 }
  0x5f   :  { %383 = vmatmul.f32.gmra.mxu0 %v1542_v31  ;;  %326 = vmatmul.f32.gmra.mxu3 %v134_v51 }
  0x60   :  { %790 = vmatpush.msrb.mxu2 %v588_v13 }
  0x61   :  { %434 = vmatmul.f32.gmra.mxu1 %v1542_v31  ;;  %v600_v31 = vand.u32 4294901760, %v599_v30 }
  0x62   :  { %794 = vmatpush.msrb.mxu2 %v594_v20 }
  0x63   :  { %v601_v33 = vsub.f32 %v599_v30, %v600_v31 }
  0x64   :  { %798 = vmatpush.msrb.mxu2 %v600_v31 }
  0x65   :  { %v602_v36 = vand.u32 4294901760, %v601_v33 }
  0x66   :  { %265 = vmatmul.f32.gmra.mxu2 %v141_v57 }
  0x67   :  { %387 = vmatmul.f32.gmra.mxu0 %v1575_v52  ;;  %332 = vmatmul.f32.gmra.mxu3 %v142_v61 }
  0x68   :  { %603 = vmatpush.msra.mxu3 %v602_v36 }
  0x69   :  { %438 = vmatmul.f32.gmra.mxu1 %v1575_v52 }
  0x6a   :  { %845 = vmatpush.msrb.mxu3 %v1598_v5 }
  0x6c   :  { %847 = vmatpush.msrb.mxu3 %v497_v11 }
  0x6e   :  { %849 = vmatpush.msrb.mxu3 %v499_v17 }
  0x70   :  { %851 = vmatpush.msrb.mxu3 %v501_v28 }
  0x8c   :  { %v90_v19 = vpop.f32.mrf.mxu0 }
  0x8d   :  { %v91_v45 = vadd.f32 %v1647_v43, %v90_v19 }
  0x8e   :  { %v177_v21 = vpop.f32.mrf.mxu1 }
  0x8f   :  { %v178_v48 = vadd.f32 %v177_v21, %v91_v45 }
  0x91   :  { %v1626_v24 = vpop.f32.mrf.mxu2 }
  0x92   :  { %v1628_v25 = vpop.f32.mrf.mxu3  ;;  %v123_v36 = vadd.f32 %v1647_v43, %v1626_v24 }
  0x94   :  { %v98_v27 = vpop.f32.mrf.mxu0 }
  0x95   :  { %v99_v52 = vadd.f32 %v1647_v43, %v98_v27 }
  0x96   :  { %v181_v29 = vpop.f32.mrf.mxu1 }
  0x97   :  { %v182_v57 = vadd.f32 %v181_v29, %v99_v52 }
  0x99   :  { %v1633_v32 = vpop.f32.mrf.mxu2 }
  0x9a   :  { %v1635_v34 = vpop.f32.mrf.mxu3 }
  0x9c   :  { %v106_v35 = vpop.f32.mrf.mxu0 }
  0x9d   :  { %v107_v63 = vadd.f32 %v1647_v43, %v106_v35 }
  0x9e   :  { %v185_v37 = vpop.f32.mrf.mxu1 }
  0x9f   :  { %v186_v7 = vadd.f32 %v185_v37, %v107_v63 }
  0xa1   :  { %v1638_v38 = vpop.f32.mrf.mxu2 }
  0xa2   :  { %v1640_v39 = vpop.f32.mrf.mxu3 }
  0xa4   :  { %v114_v40 = vpop.f32.mrf.mxu0 }
  0xa5   :  { %v115_v15 = vadd.f32 %v1647_v43, %v114_v40 }
  0xa6   :  { %v189_v41 = vpop.f32.mrf.mxu1 }
  0xa7   :  { %v190_v26 = vadd.f32 %v189_v41, %v115_v15 }
  0xa9   :  { %v1642_v42 = vpop.f32.mrf.mxu2 }
  0xaa   :  { %v1649_v44 = vpop.f32.mrf.mxu3 }
  0xac   :  { %v360_v46 = vpop.f32.mrf.mxu0 }
  0xae   :  { %v411_v47 = vpop.f32.mrf.mxu1 }
  0xb1   :  { %v231_v49 = vpop.f32.mrf.mxu2 }
  0xb2   :  { %v232_v50 = vadd.f32 %v231_v49, %v178_v48  ;;  %v291_v51 = vpop.f32.mrf.mxu3 }
  0xb4   :  { %v292_v53 = vadd.f32 %v291_v51, %v232_v50  ;;  %v364_v54 = vpop.f32.mrf.mxu0  ;;  %v194_v50 = vadd.f32 %v1628_v25, %v123_v36 }
  0xb6   :  { %v361_v55 = vadd.f32 %v360_v46, %v292_v53  ;;  %v415_v56 = vpop.f32.mrf.mxu1 }
  0xb8   :  { %v412_v58 = vadd.f32 %v411_v47, %v361_v55 }
  0xb9   :  { %v236_v59 = vpop.f32.mrf.mxu2 }
  0xba   :  { %v442_v60 = vmax.f32 %v412_v58, 0.0  ;;  %v237_v61 = vadd.f32 %v236_v59, %v182_v57  ;;  %v297_v62 = vpop.f32.mrf.mxu3  ;;  %v131_v57 = vadd.f32 %v1647_v43, %v1633_v32 }
  0xbc   :  { %v460_v0 = vsel %vm458_vm1, %v442_v60, 0  ;;  %v298_v1 = vadd.f32 %v297_v62, %v237_v61  ;;  %v368_v2 = vpop.f32.mrf.mxu0 }
  0xbd   :  { %v1655_v3 = vand.u32 4294901760, %v460_v0 }
  0xbe   :  { %v365_v4 = vadd.f32 %v364_v54, %v298_v1  ;;  %v419_v5 = vpop.f32.mrf.mxu1 }
  0xbf   :  { %v504_v6 = vsub.f32 %v460_v0, %v1655_v3  ;;  %605 = vmatmul.f32.vlgmr.msra.gmra.mxu3 %v1655_v3  ;;  %v198_v0 = vadd.f32 %v1635_v34, %v131_v57 }
  0xc0   :  { %v416_v8 = vadd.f32 %v415_v56, %v365_v4 }
  0xc1   :  { %v241_v10 = vpop.f32.mrf.mxu2  ;;  %663 = vmatmul.f32.vlgmr.msra.gmra.mxu0 %v504_v6  ;;  %v505_v9 = vand.u32 4294901760, %v504_v6 }
  0xc2   :  { %v443_v11 = vmax.f32 %v416_v8, 0.0  ;;  %v242_v12 = vadd.f32 %v241_v10, %v186_v7  ;;  %v303_v13 = vpop.f32.mrf.mxu3  ;;  %v139_v10 = vadd.f32 %v1647_v43, %v1638_v38 }
  0xc3   :  { %725 = vmatmul.f32.vlgmr.msra.gmra.mxu1 %v505_v9  ;;  %v506_v14 = vsub.f32 %v504_v6, %v505_v9 }
  0xc4   :  { %v463_v16 = vsel %vm458_vm1, %v443_v11, 0  ;;  %v304_v17 = vadd.f32 %v303_v13, %v242_v12  ;;  %v372_v18 = vpop.f32.mrf.mxu0  ;;  %v202_v15 = vadd.f32 %v1640_v39, %v139_v10 }
  0xc5   :  { %v1661_v19 = vand.u32 4294901760, %v463_v16  ;;  %v507_v20 = vand.u32 4294901760, %v506_v14 }
  0xc6   :  { %v369_v21 = vadd.f32 %v368_v2, %v304_v17  ;;  %v423_v22 = vpop.f32.mrf.mxu1 }
  0xc7   :  { %508 = vmatmul.f32.vlgmr.msra.gmra.mxu2 %v507_v20  ;;  %609 = vmatmul.f32.gmra.mxu3 %v1661_v19  ;;  %v512_v23 = vsub.f32 %v463_v16, %v1661_v19 }
  0xc8   :  { %v420_v27 = vadd.f32 %v419_v5, %v369_v21 }
  0xc9   :  { %v246_v28 = vpop.f32.mrf.mxu2  ;;  %668 = vmatmul.f32.gmra.mxu0 %v512_v23  ;;  %v513_v29 = vand.u32 4294901760, %v512_v23 }
  0xca   :  { %v444_v30 = vmax.f32 %v420_v27, 0.0  ;;  %v247_v31 = vadd.f32 %v246_v28, %v190_v26  ;;  %v309_v33 = vpop.f32.mrf.mxu3  ;;  %v147_v27 = vadd.f32 %v1647_v43, %v1642_v42 }
  0xcb   :  { %731 = vmatmul.f32.gmra.mxu1 %v513_v29  ;;  %v514_v35 = vsub.f32 %v512_v23, %v513_v29 }
  0xcc   :  { %v466_v37 = vsel %vm458_vm1, %v444_v30, 0  ;;  %v310_v40 = vadd.f32 %v309_v33, %v247_v31  ;;  %v376_v47 = vpop.f32.mrf.mxu0 }
  0xcd   :  { %v1668_v45 = vand.u32 4294901760, %v466_v37  ;;  %v515_v46 = vand.u32 4294901760, %v514_v35  ;;  %v206_v35 = vadd.f32 %v1649_v44, %v147_v27 }
  0xce   :  { %v373_v41 = vadd.f32 %v372_v18, %v310_v40  ;;  %v427_v49 = vpop.f32.mrf.mxu1 }
  0xcf   :  { %516 = vmatmul.f32.gmra.mxu2 %v515_v46  ;;  %613 = vmatmul.f32.gmra.mxu3 %v1668_v45  ;;  %v520_v48 = vsub.f32 %v466_v37, %v1668_v45 }
  0xd0   :  { %v424_v51 = vadd.f32 %v423_v22, %v373_v41 }
  0xd1   :  { %v251_v52 = vpop.f32.mrf.mxu2  ;;  %673 = vmatmul.f32.gmra.mxu0 %v520_v48  ;;  %v521_v24 = vand.u32 4294901760, %v520_v48 }
  0xd2   :  { %v445_v53 = vmax.f32 %v424_v51, 0.0  ;;  %v252_v54 = vadd.f32 %v251_v52, %v194_v50  ;;  %v315_v55 = vpop.f32.mrf.mxu3 }
  0xd3   :  { %737 = vmatmul.f32.gmra.mxu1 %v521_v24  ;;  %v522_v56 = vsub.f32 %v520_v48, %v521_v24 }
  0xd4   :  { %v469_v58 = vsel %vm458_vm1, %v445_v53, 0  ;;  %v316_v59 = vadd.f32 %v315_v55, %v252_v54  ;;  %v380_v63 = vpop.f32.mrf.mxu0 }
  0xd5   :  { %v1676_v60 = vand.u32 4294901760, %v469_v58  ;;  %v523_v61 = vand.u32 4294901760, %v522_v56 }
  0xd6   :  { %v377_v62 = vadd.f32 %v376_v47, %v316_v59  ;;  %v431_v32 = vpop.f32.mrf.mxu1 }
  0xd7   :  { %524 = vmatmul.f32.gmra.mxu2 %v523_v61  ;;  %617 = vmatmul.f32.gmra.mxu3 %v1676_v60  ;;  %v528_v25 = vsub.f32 %v469_v58, %v1676_v60 }
  0xd8   :  { %v428_v1 = vadd.f32 %v427_v49, %v377_v62 }
  0xd9   :  { %v256_v2 = vpop.f32.mrf.mxu2  ;;  %678 = vmatmul.f32.gmra.mxu0 %v528_v25  ;;  %v529_v4 = vand.u32 4294901760, %v528_v25 }
  0xda   :  { %v446_v5 = vmax.f32 %v428_v1, 0.0  ;;  %v257_v6 = vadd.f32 %v256_v2, %v198_v0  ;;  %v321_v7 = vpop.f32.mrf.mxu3 }
  0xdb   :  { %743 = vmatmul.f32.gmra.mxu1 %v529_v4  ;;  %v530_v8 = vsub.f32 %v528_v25, %v529_v4 }
  0xdc   :  { %v472_v9 = vsel %vm458_vm1, %v446_v5, 0  ;;  %v322_v11 = vadd.f32 %v321_v7, %v257_v6  ;;  %v384_v20 = vpop.f32.mrf.mxu0  ;;  %v895_v5 = vld [vmem:[%s1917_s5 + $0x10] sm:$0xff] }
  0xdd   :  { %v1684_v12 = vand.u32 4294901760, %v472_v9  ;;  %v531_v13 = vand.u32 4294901760, %v530_v8  ;;  %v939_v6 = vand.u32 4294901760, %v895_v5 }
  0xde   :  { %v381_v34 = vadd.f32 %v380_v63, %v322_v11  ;;  %v435_v23 = vpop.f32.mrf.mxu1 }
  0xdf   :  { %532 = vmatmul.f32.gmra.mxu2 %v531_v13  ;;  %621 = vmatmul.f32.gmra.mxu3 %v1684_v12  ;;  %v536_v14 = vsub.f32 %v472_v9, %v1684_v12  ;;  %v1029_v7 = vsub.f32 %v895_v5, %v939_v6 }
  0xe0   :  { %v432_v16 = vadd.f32 %v431_v32, %v381_v34 }
  0xe1   :  { %v261_v17 = vpop.f32.mrf.mxu2  ;;  %683 = vmatmul.f32.gmra.mxu0 %v536_v14  ;;  %v537_v18 = vand.u32 4294901760, %v536_v14  ;;  %v1030_v9 = vand.u32 4294901760, %v1029_v7 }
  0xe2   :  { %v447_v38 = vmax.f32 %v432_v16, 0.0  ;;  %v262_v21 = vadd.f32 %v261_v17, %v202_v15  ;;  %v327_v22 = vpop.f32.mrf.mxu3 }
  0xe3   :  { %749 = vmatmul.f32.gmra.mxu1 %v537_v18  ;;  %v538_v26 = vsub.f32 %v536_v14, %v537_v18  ;;  %v1031_v11 = vsub.f32 %v1029_v7, %v1030_v9  ;;  %v894_v14 = vld [vmem:[%s1917_s5 + $0x8] sm:$0xff] }
  0xe4   :  { %v475_v28 = vsel %vm458_vm1, %v447_v38, 0  ;;  %v328_v29 = vadd.f32 %v327_v22, %v262_v21  ;;  %v388_v42 = vpop.f32.mrf.mxu0  ;;  %v941_v15 = vand.u32 4294901760, %v894_v14  ;;  %v893_v22 = vld [vmem:[%s1917_s5] sm:$0xff] }
  0xe5   :  { %v543_v30 = vand.u32 4294901760, %v475_v28  ;;  %v539_v31 = vand.u32 4294901760, %v538_v26 }
  0xe6   :  { %v385_v39 = vadd.f32 %v384_v20, %v328_v29  ;;  %v439_v51 = vpop.f32.mrf.mxu1  ;;  %v1035_v16 = vsub.f32 %v894_v14, %v941_v15 }
  0xe7   :  { %540 = vmatmul.f32.gmra.mxu2 %v539_v31  ;;  %625 = vmatmul.f32.gmra.mxu3 %v543_v30  ;;  %v544_v33 = vsub.f32 %v475_v28, %v543_v30 }
  0xe8   :  { %v436_v36 = vadd.f32 %v435_v23, %v385_v39  ;;  %v1036_v20 = vand.u32 4294901760, %v1035_v16  ;;  %v943_v23 = vand.u32 4294901760, %v893_v22 }
  0xe9   :  { %v266_v37 = vpop.f32.mrf.mxu2  ;;  %688 = vmatmul.f32.gmra.mxu0 %v544_v33  ;;  %v545_v40 = vand.u32 4294901760, %v544_v33 }
  0xea   :  { %v448_v46 = vmax.f32 %v436_v36, 0.0  ;;  %v267_v47 = vadd.f32 %v266_v37, %v206_v35  ;;  %v333_v41 = vpop.f32.mrf.mxu3  ;;  %v1037_v38 = vsub.f32 %v1035_v16, %v1036_v20  ;;  %v1041_v28 = vsub.f32 %v893_v22, %v943_v23  ;;  %v1740_v37 = vld [vmem:[%s1916_s4] ss:$0 sm:$0xff] }
  0xeb   :  { %755 = vmatmul.f32.gmra.mxu1 %v545_v40  ;;  %v546_v43 = vsub.f32 %v544_v33, %v545_v40 }
  0xec   :  { %v478_v48 = vsel %vm458_vm1, %v448_v46, 0  ;;  %v334_v49 = vadd.f32 %v333_v41, %v267_v47  ;;  %v1038_v21 = vand.u32 4294901760, %v1037_v38  ;;  %v1042_v29 = vand.u32 4294901760, %v1041_v28 }
  0xed   :  { %v551_v50 = vand.u32 4294901760, %v478_v48  ;;  %v547_v52 = vand.u32 4294901760, %v546_v43 }
  0xee   :  { %v389_v24 = vadd.f32 %v388_v42, %v334_v49 }
  0xef   :  { %548 = vmatmul.f32.gmra.mxu2 %v547_v52  ;;  %629 = vmatmul.f32.gmra.mxu3 %v551_v50  ;;  %v552_v44 = vsub.f32 %v478_v48, %v551_v50 }
  0xf0   :  { %v440_v53 = vadd.f32 %v439_v51, %v389_v24 }
  0xf1   :  { %693 = vmatmul.f32.gmra.mxu0 %v552_v44  ;;  %v553_v54 = vand.u32 4294901760, %v552_v44 }
  0xf2   :  { %v449_v55 = vmax.f32 %v440_v53, 0.0 }
  0xf3   :  { %761 = vmatmul.f32.gmra.mxu1 %v553_v54  ;;  %v554_v56 = vsub.f32 %v552_v44, %v553_v54 }
  0xf4   :  { %v481_v57 = vsel %vm458_vm1, %v449_v55, 0 }
  0xf5   :  { %v559_v58 = vand.u32 4294901760, %v481_v57  ;;  %v555_v59 = vand.u32 4294901760, %v554_v56 }
  0xf7   :  { %556 = vmatmul.f32.gmra.mxu2 %v555_v59  ;;  %633 = vmatmul.f32.gmra.mxu3 %v559_v58  ;;  %v560_v61 = vsub.f32 %v481_v57, %v559_v58 }
  0xf9   :  { %698 = vmatmul.f32.gmra.mxu0 %v560_v61  ;;  %v561_v62 = vand.u32 4294901760, %v560_v61 }
  0xfb   :  { %767 = vmatmul.f32.gmra.mxu1 %v561_v62  ;;  %v562_v25 = vsub.f32 %v560_v61, %v561_v62 }
  0xfd   :  { %v563_v63 = vand.u32 4294901760, %v562_v25 }
  0xff   :  { %564 = vmatmul.f32.gmra.mxu2 %v563_v63  ;;  %853 = vmatmul.f32.vlgmr.msrb.gmra.mxu3 %v1655_v3 }
 0x107   :  { %800 = vmatmul.f32.vlgmr.msrb.gmra.mxu2 %v1655_v3  ;;  %857 = vmatmul.f32.gmra.mxu3 %v1661_v19  ;;  %v896_v3 = vld [vmem:[%s1917_s5 + $0x18] sm:$0xff] }
 0x10f   :  { %804 = vmatmul.f32.gmra.mxu2 %v1661_v19  ;;  %861 = vmatmul.f32.gmra.mxu3 %v1668_v45  ;;  %v937_v19 = vand.u32 4294901760, %v896_v3 }
 0x111   :  { %938 = vmatpush.msrb.mxu0 %v937_v19  ;;  %1157 = vmatpush.msra.mxu3 %v937_v19 }
 0x113   :  { %940 = vmatpush.msrb.mxu0 %v939_v6  ;;  %1159 = vmatpush.msra.mxu3 %v939_v6 }
 0x115   :  { %942 = vmatpush.msrb.mxu0 %v941_v15  ;;  %1161 = vmatpush.msra.mxu3 %v941_v15 }
 0x117   :  { %808 = vmatmul.f32.gmra.mxu2 %v1668_v45  ;;  %865 = vmatmul.f32.gmra.mxu3 %v1676_v60  ;;  %v1023_v45 = vsub.f32 %v896_v3, %v937_v19 }
 0x118   :  { %944 = vmatpush.msrb.mxu0 %v943_v23  ;;  %1163 = vmatpush.msra.mxu3 %v943_v23 }
 0x119   :  { %1093 = vmatpush.msra.mxu2 %v1023_v45 }
 0x11b   :  { %1096 = vmatpush.msra.mxu2 %v1029_v7 }
 0x11d   :  { %1099 = vmatpush.msra.mxu2 %v1035_v16 }
 0x11f   :  { %812 = vmatmul.f32.gmra.mxu2 %v1676_v60  ;;  %869 = vmatmul.f32.gmra.mxu3 %v1684_v12  ;;  %v1024_v60 = vand.u32 4294901760, %v1023_v45 }
 0x120   :  { %1102 = vmatpush.msra.mxu2 %v1041_v28 }
 0x121   :  { %v1025_v1 = vsub.f32 %v1023_v45, %v1024_v60  ;;  %1228 = vmatpush.msra.mxu0 %v1024_v60 }
 0x123   :  { %v1026_v2 = vand.u32 4294901760, %v1025_v1  ;;  %1232 = vmatpush.msra.mxu0 %v1030_v9 }
 0x125   :  { %1027 = vmatpush.msrb.mxu1 %v1026_v2  ;;  %1236 = vmatpush.msra.mxu0 %v1036_v20 }
 0x127   :  { %816 = vmatmul.f32.gmra.mxu2 %v1684_v12  ;;  %873 = vmatmul.f32.gmra.mxu3 %v543_v30  ;;  %v1032_v12 = vand.u32 4294901760, %v1031_v11 }
 0x128   :  { %1240 = vmatpush.msra.mxu0 %v1042_v29 }
 0x129   :  { %1033 = vmatpush.msrb.mxu1 %v1032_v12 }
 0x12b   :  { %1039 = vmatpush.msrb.mxu1 %v1038_v21 }
 0x12f   :  { %820 = vmatmul.f32.gmra.mxu2 %v543_v30  ;;  %877 = vmatmul.f32.gmra.mxu3 %v551_v50  ;;  %v1043_v30 = vsub.f32 %v1041_v28, %v1042_v29 }
 0x131   :  { %v1044_v31 = vand.u32 4294901760, %v1043_v30 }
 0x133   :  { %1045 = vmatpush.msrb.mxu1 %v1044_v31 }
 0x135   :  { %1287 = vmatpush.msra.mxu1 %v937_v19 }
 0x137   :  { %824 = vmatmul.f32.gmra.mxu2 %v551_v50  ;;  %881 = vmatmul.f32.gmra.mxu3 %v559_v58 }
 0x138   :  { %1289 = vmatpush.msra.mxu1 %v939_v6 }
 0x13a   :  { %1291 = vmatpush.msra.mxu1 %v941_v15 }
 0x13c   :  { %1293 = vmatpush.msra.mxu1 %v943_v23 }
 0x13e   :  { %v664_v35 = vpop.f32.mrf.mxu0 }
 0x13f   :  { %828 = vmatmul.f32.gmra.mxu2 %v559_v58 }
 0x140   :  { %v726_v36 = vpop.f32.mrf.mxu1 }
 0x142   :  { %v1708_v0 = vpop.f32.mrf.mxu3 }
 0x146   :  { %v669_v41 = vpop.f32.mrf.mxu0 }
 0x148   :  { %v732_v49 = vpop.f32.mrf.mxu1 }
 0x14a   :  { %v509_v4 = vpop.f32.mrf.mxu2  ;;  %v1710_v32 = vpop.f32.mrf.mxu3 }
 0x14b   :  { %v510_v47 = vadd.f32 %v1740_v37, %v509_v4 }
 0x14d   :  { %v607_v42 = vadd.f32 %v1708_v0, %v510_v47 }
 0x14e   :  { %v674_v52 = vpop.f32.mrf.mxu0 }
 0x14f   :  { %v665_v51 = vadd.f32 %v664_v35, %v607_v42 }
 0x150   :  { %v738_v59 = vpop.f32.mrf.mxu1 }
 0x151   :  { %v727_v44 = vadd.f32 %v726_v36, %v665_v51 }
 0x152   :  { %v517_v8 = vpop.f32.mrf.mxu2  ;;  %v1715_v10 = vpop.f32.mrf.mxu3 }
 0x153   :  { %v518_v50 = vadd.f32 %v1740_v37, %v517_v8 }
 0x155   :  { %v611_v24 = vadd.f32 %v1710_v32, %v518_v50 }
 0x156   :  { %v679_v60 = vpop.f32.mrf.mxu0 }
 0x157   :  { %v670_v58 = vadd.f32 %v669_v41, %v611_v24 }
 0x158   :  { %v744_v7 = vpop.f32.mrf.mxu1 }
 0x159   :  { %v733_v63 = vadd.f32 %v732_v49, %v670_v58 }
 0x15a   :  { %v525_v13 = vpop.f32.mrf.mxu2  ;;  %v1717_v34 = vpop.f32.mrf.mxu3 }
 0x15b   :  { %v526_v56 = vadd.f32 %v1740_v37, %v525_v13 }
 0x15d   :  { %v615_v62 = vadd.f32 %v1715_v10, %v526_v56 }
 0x15e   :  { %v684_v21 = vpop.f32.mrf.mxu0 }
 0x15f   :  { %v675_v32 = vadd.f32 %v674_v52, %v615_v62 }
 0x160   :  { %v750_v35 = vpop.f32.mrf.mxu1 }
 0x161   :  { %v739_v11 = vadd.f32 %v738_v59, %v675_v32 }
 0x162   :  { %v1722_v17 = vpop.f32.mrf.mxu2  ;;  %v1724_v18 = vpop.f32.mrf.mxu3 }
 0x163   :  { %v534_v2 = vadd.f32 %v1740_v37, %v1722_v17 }
 0x165   :  { %v619_v10 = vadd.f32 %v1717_v34, %v534_v2 }
 0x166   :  { %v689_v24 = vpop.f32.mrf.mxu0 }
 0x167   :  { %v680_v38 = vadd.f32 %v679_v60, %v619_v10 }
 0x168   :  { %v756_v62 = vpop.f32.mrf.mxu1 }
 0x169   :  { %v745_v31 = vadd.f32 %v744_v7, %v680_v38 }
 0x16a   :  { %v1729_v26 = vpop.f32.mrf.mxu2  ;;  %v1731_v27 = vpop.f32.mrf.mxu3 }
 0x16b   :  { %v542_v20 = vadd.f32 %v1740_v37, %v1729_v26 }
 0x16d   :  { %v623_v29 = vadd.f32 %v1724_v18, %v542_v20 }
 0x16e   :  { %v694_v7 = vpop.f32.mrf.mxu0 }
 0x16f   :  { %v685_v49 = vadd.f32 %v684_v21, %v623_v29 }
 0x172   :  { %v1733_v39 = vpop.f32.mrf.mxu2  ;;  %v1735_v33 = vpop.f32.mrf.mxu3 }
 0x17a   :  { %v1742_v40 = vpop.f32.mrf.mxu2  ;;  %v1744_v46 = vpop.f32.mrf.mxu3 }
 0x182   :  { %v1748_v43 = vpop.f32.mrf.mxu2  ;;  %v854_v48 = vpop.f32.mrf.mxu3 }
 0x18a   :  { %v801_v53 = vpop.f32.mrf.mxu2  ;;  %v858_v54 = vpop.f32.mrf.mxu3 }
 0x18b   :  { %v802_v55 = vadd.f32 %v801_v53, %v727_v44 }
 0x18d   :  { %v1753_v57 = vadd.f32 %v854_v48, %v802_v55  ;;  %v550_v48 = vadd.f32 %v1740_v37, %v1733_v39  ;;  %v751_v55 = vadd.f32 %v750_v35, %v685_v49 }
 0x18f   :  { %v885_v61 = vmax.f32 %v1753_v57, 0.0  ;;  %v627_v53 = vadd.f32 %v1731_v27, %v550_v48 }
 0x191   :  { %v902_v25 = vsel %vm458_vm1, %v885_v61, 0 }
 0x192   :  { %v1760_v3 = vand.u32 4294901760, %v902_v25  ;;  %v805_v19 = vpop.f32.mrf.mxu2  ;;  %v862_v45 = vpop.f32.mrf.mxu3 }
 0x193   :  { %v806_v0 = vadd.f32 %v805_v19, %v733_v63  ;;  %v558_v63 = vadd.f32 %v1740_v37, %v1742_v40  ;;  %v690_v19 = vadd.f32 %v689_v24, %v627_v53 }
 0x194   :  { %v946_v1 = vsub.f32 %v902_v25, %v1760_v3  ;;  %1047 = vmatmul.f32.vlgmr.msrb.gmra.mxu1 %v1760_v3 }
 0x195   :  { %v1766_v4 = vadd.f32 %v858_v54, %v806_v0  ;;  %v631_v2 = vadd.f32 %v1735_v33, %v558_v63 }
 0x196   :  { %v947_v5 = vand.u32 4294901760, %v946_v1  ;;  %1105 = vmatmul.f32.vlgmr.msra.gmra.mxu2 %v946_v1 }
 0x197   :  { %v886_v6 = vmax.f32 %v1766_v4, 0.0 }
 0x198   :  { %1167 = vmatmul.f32.vlgmr.msra.gmra.mxu3 %v947_v5  ;;  %v948_v8 = vsub.f32 %v946_v1, %v947_v5  ;;  %v757_v5 = vadd.f32 %v756_v62, %v690_v19 }
 0x199   :  { %v905_v9 = vsel %vm458_vm1, %v886_v6, 0 }
 0x19a   :  { %v1773_v12 = vand.u32 4294901760, %v905_v9  ;;  %v809_v13 = vpop.f32.mrf.mxu2  ;;  %v949_v14 = vand.u32 4294901760, %v948_v8  ;;  %v866_v16 = vpop.f32.mrf.mxu3 }
 0x19b   :  { %v810_v15 = vadd.f32 %v809_v13, %v739_v11  ;;  %v566_v13 = vadd.f32 %v1740_v37, %v1748_v43 }
 0x19c   :  { %950 = vmatmul.f32.vlgmr.msrb.gmra.mxu0 %v949_v14  ;;  %1051 = vmatmul.f32.gmra.mxu1 %v1773_v12  ;;  %v954_v17 = vsub.f32 %v905_v9, %v1773_v12  ;;  %v695_v14 = vadd.f32 %v694_v7, %v631_v2 }
 0x19d   :  { %v1779_v34 = vadd.f32 %v862_v45, %v810_v15  ;;  %v762_v15 = vpop.f32.mrf.mxu1  ;;  %v635_v38 = vadd.f32 %v1744_v46, %v566_v13 }
 0x19e   :  { %1110 = vmatmul.f32.gmra.mxu2 %v954_v17  ;;  %v955_v22 = vand.u32 4294901760, %v954_v17 }
 0x19f   :  { %v887_v23 = vmax.f32 %v1779_v34, 0.0 }
 0x1a0   :  { %1173 = vmatmul.f32.gmra.mxu3 %v955_v22  ;;  %v956_v28 = vsub.f32 %v954_v17, %v955_v22  ;;  %v763_v22 = vadd.f32 %v762_v15, %v695_v14  ;;  %v1852_v15 = vld [vmem:[%s1918_s6] ss:$0 sm:$0xff]  ;;  %s1439_s6 = smov 32  }
 0x1a1   :  { %v908_v30 = vsel %vm458_vm1, %v887_v23, 0 }
 0x1a2   :  { %v1786_v36 = vand.u32 4294901760, %v908_v30  ;;  %v813_v26 = vpop.f32.mrf.mxu2  ;;  %v957_v47 = vand.u32 4294901760, %v956_v28  ;;  %v870_v50 = vpop.f32.mrf.mxu3 }
 0x1a3   :  { %v814_v41 = vadd.f32 %v813_v26, %v745_v31  ;;  %v699_v31 = vpop.f32.mrf.mxu0 }
 0x1a4   :  { %958 = vmatmul.f32.gmra.mxu0 %v957_v47  ;;  %1055 = vmatmul.f32.gmra.mxu1 %v1786_v36  ;;  %v962_v42 = vsub.f32 %v908_v30, %v1786_v36  ;;  %v700_v47 = vadd.f32 %v699_v31, %v635_v38 }
 0x1a5   :  { %v1792_v18 = vadd.f32 %v866_v16, %v814_v41 }
 0x1a6   :  { %1115 = vmatmul.f32.gmra.mxu2 %v962_v42  ;;  %v963_v51 = vand.u32 4294901760, %v962_v42 }
 0x1a7   :  { %v888_v52 = vmax.f32 %v1792_v18, 0.0 }
 0x1a8   :  { %1179 = vmatmul.f32.gmra.mxu3 %v963_v51  ;;  %v964_v44 = vsub.f32 %v962_v42, %v963_v51  ;;  %v768_v42 = vpop.f32.mrf.mxu1 }
 0x1a9   :  { %v911_v54 = vsel %vm458_vm1, %v888_v52, 0 }
 0x1aa   :  { %v1799_v56 = vand.u32 4294901760, %v911_v54  ;;  %v817_v39 = vpop.f32.mrf.mxu2  ;;  %v965_v58 = vand.u32 4294901760, %v964_v44  ;;  %v874_v60 = vpop.f32.mrf.mxu3 }
 0x1ab   :  { %v818_v59 = vadd.f32 %v817_v39, %v751_v55 }
 0x1ac   :  { %966 = vmatmul.f32.gmra.mxu0 %v965_v58  ;;  %1059 = vmatmul.f32.gmra.mxu1 %v1799_v56  ;;  %v970_v25 = vsub.f32 %v911_v54, %v1799_v56 }
 0x1ad   :  { %v1805_v27 = vadd.f32 %v870_v50, %v818_v59  ;;  %v769_v50 = vadd.f32 %v768_v42, %v700_v47 }
 0x1ae   :  { %1120 = vmatmul.f32.gmra.mxu2 %v970_v25  ;;  %v971_v45 = vand.u32 4294901760, %v970_v25 }
 0x1af   :  { %v889_v0 = vmax.f32 %v1805_v27, 0.0 }
 0x1b0   :  { %1185 = vmatmul.f32.gmra.mxu3 %v971_v45  ;;  %v972_v1 = vsub.f32 %v970_v25, %v971_v45 }
 0x1b1   :  { %v914_v32 = vsel %vm458_vm1, %v889_v0, 0 }
 0x1b2   :  { %v1812_v8 = vand.u32 4294901760, %v914_v32  ;;  %v821_v40 = vpop.f32.mrf.mxu2  ;;  %v973_v10 = vand.u32 4294901760, %v972_v1  ;;  %v878_v29 = vpop.f32.mrf.mxu3 }
 0x1b3   :  { %v822_v9 = vadd.f32 %v821_v40, %v757_v5 }
 0x1b4   :  { %974 = vmatmul.f32.gmra.mxu0 %v973_v10  ;;  %1063 = vmatmul.f32.gmra.mxu1 %v1812_v8  ;;  %v978_v11 = vsub.f32 %v914_v32, %v1812_v8 }
 0x1b5   :  { %v1818_v33 = vadd.f32 %v874_v60, %v822_v9 }
 0x1b6   :  { %1125 = vmatmul.f32.gmra.mxu2 %v978_v11  ;;  %v979_v16 = vand.u32 4294901760, %v978_v11 }
 0x1b7   :  { %v890_v17 = vmax.f32 %v1818_v33, 0.0 }
 0x1b8   :  { %1191 = vmatmul.f32.gmra.mxu3 %v979_v16  ;;  %v980_v20 = vsub.f32 %v978_v11, %v979_v16 }
 0x1b9   :  { %v917_v21 = vsel %vm458_vm1, %v890_v17, 0 }
 0x1ba   :  { %v985_v28 = vand.u32 4294901760, %v917_v21  ;;  %v825_v37 = vpop.f32.mrf.mxu2  ;;  %v981_v43 = vand.u32 4294901760, %v980_v20  ;;  %v882_v54 = vpop.f32.mrf.mxu3 }
 0x1bb   :  { %v826_v30 = vadd.f32 %v825_v37, %v763_v22 }
 0x1bc   :  { %982 = vmatmul.f32.gmra.mxu0 %v981_v43  ;;  %1067 = vmatmul.f32.gmra.mxu1 %v985_v28  ;;  %v986_v35 = vsub.f32 %v917_v21, %v985_v28 }
 0x1bd   :  { %v1825_v26 = vadd.f32 %v878_v29, %v826_v30 }
 0x1be   :  { %1130 = vmatmul.f32.gmra.mxu2 %v986_v35  ;;  %v987_v41 = vand.u32 4294901760, %v986_v35 }
 0x1bf   :  { %v891_v46 = vmax.f32 %v1825_v26, 0.0 }
 0x1c0   :  { %1197 = vmatmul.f32.gmra.mxu3 %v987_v41  ;;  %v988_v48 = vsub.f32 %v986_v35, %v987_v41 }
 0x1c1   :  { %v920_v49 = vsel %vm458_vm1, %v891_v46, 0 }
 0x1c2   :  { %v993_v51 = vand.u32 4294901760, %v920_v49  ;;  %v829_v24 = vpop.f32.mrf.mxu2  ;;  %v989_v44 = vand.u32 4294901760, %v988_v48 }
 0x1c3   :  { %v830_v53 = vadd.f32 %v829_v24, %v769_v50 }
 0x1c4   :  { %990 = vmatmul.f32.gmra.mxu0 %v989_v44  ;;  %1071 = vmatmul.f32.gmra.mxu1 %v993_v51  ;;  %v994_v55 = vsub.f32 %v920_v49, %v993_v51 }
 0x1c5   :  { %v1831_v39 = vadd.f32 %v882_v54, %v830_v53 }
 0x1c6   :  { %1135 = vmatmul.f32.gmra.mxu2 %v994_v55  ;;  %v995_v58 = vand.u32 4294901760, %v994_v55 }
 0x1c7   :  { %v892_v59 = vmax.f32 %v1831_v39, 0.0 }
 0x1c8   :  { %1203 = vmatmul.f32.gmra.mxu3 %v995_v58  ;;  %v996_v62 = vsub.f32 %v994_v55, %v995_v58 }
 0x1c9   :  { %v923_v25 = vsel %vm458_vm1, %v892_v59, 0 }
 0x1ca   :  { %v1001_v63 = vand.u32 4294901760, %v923_v25  ;;  %v997_v19 = vand.u32 4294901760, %v996_v62 }
 0x1cc   :  { %998 = vmatmul.f32.gmra.mxu0 %v997_v19  ;;  %1075 = vmatmul.f32.gmra.mxu1 %v1001_v63  ;;  %v1002_v45 = vsub.f32 %v923_v25, %v1001_v63 }
 0x1ce   :  { %1140 = vmatmul.f32.gmra.mxu2 %v1002_v45  ;;  %v1003_v60 = vand.u32 4294901760, %v1002_v45 }
 0x1d0   :  { %1209 = vmatmul.f32.gmra.mxu3 %v1003_v60  ;;  %v1004_v1 = vsub.f32 %v1002_v45, %v1003_v60 }
 0x1d2   :  { %v1005_v2 = vand.u32 4294901760, %v1004_v1 }
 0x1d4   :  { %1006 = vmatmul.f32.gmra.mxu0 %v1005_v2  ;;  %1295 = vmatmul.f32.vlgmr.msra.gmra.mxu1 %v1760_v3 }
 0x1dc   :  { %1242 = vmatmul.f32.vlgmr.msra.gmra.mxu0 %v1760_v3  ;;  %1299 = vmatmul.f32.gmra.mxu1 %v1773_v12 }
 0x1e4   :  { %1246 = vmatmul.f32.gmra.mxu0 %v1773_v12  ;;  %1303 = vmatmul.f32.gmra.mxu1 %v1786_v36 }
 0x1ec   :  { %1250 = vmatmul.f32.gmra.mxu0 %v1786_v36  ;;  %1307 = vmatmul.f32.gmra.mxu1 %v1799_v56 }
 0x1f4   :  { %1254 = vmatmul.f32.gmra.mxu0 %v1799_v56  ;;  %1311 = vmatmul.f32.gmra.mxu1 %v1812_v8 }
 0x1fc   :  { %1258 = vmatmul.f32.gmra.mxu0 %v1812_v8  ;;  %1315 = vmatmul.f32.gmra.mxu1 %v985_v28 }
 0x204   :  { %1262 = vmatmul.f32.gmra.mxu0 %v985_v28  ;;  %1319 = vmatmul.f32.gmra.mxu1 %v993_v51 }
 0x20c   :  { %1266 = vmatmul.f32.gmra.mxu0 %v993_v51  ;;  %1323 = vmatmul.f32.gmra.mxu1 %v1001_v63 }
 0x211   :  { %v1048_v3 = vpop.f32.mrf.mxu1 }
 0x214   :  { %1270 = vmatmul.f32.gmra.mxu0 %v1001_v63 }
 0x219   :  { %v951_v12 = vpop.f32.mrf.mxu0  ;;  %v1052_v32 = vpop.f32.mrf.mxu1 }
 0x21a   :  { %v1106_v8 = vpop.f32.mrf.mxu2  ;;  %v952_v21 = vadd.f32 %v1852_v15, %v951_v12 }
 0x21b   :  { %v1168_v16 = vpop.f32.mrf.mxu3 }
 0x21c   :  { %v1049_v28 = vadd.f32 %v1048_v3, %v952_v21 }
 0x21e   :  { %v1107_v30 = vadd.f32 %v1106_v8, %v1049_v28 }
 0x220   :  { %v1169_v35 = vadd.f32 %v1168_v16, %v1107_v30 }
 0x221   :  { %v959_v5 = vpop.f32.mrf.mxu0  ;;  %v1056_v7 = vpop.f32.mrf.mxu1 }
 0x222   :  { %v1111_v22 = vpop.f32.mrf.mxu2  ;;  %v960_v31 = vadd.f32 %v1852_v15, %v959_v5 }
 0x223   :  { %v1174_v43 = vpop.f32.mrf.mxu3 }
 0x224   :  { %v1053_v47 = vadd.f32 %v1052_v32, %v960_v31 }
 0x226   :  { %v1112_v50 = vadd.f32 %v1111_v22, %v1053_v47 }
 0x228   :  { %v1175_v53 = vadd.f32 %v1174_v43, %v1112_v50 }
 0x229   :  { %v967_v36 = vpop.f32.mrf.mxu0  ;;  %v1060_v40 = vpop.f32.mrf.mxu1 }
 0x22a   :  { %v1116_v41 = vpop.f32.mrf.mxu2  ;;  %v968_v51 = vadd.f32 %v1852_v15, %v967_v36 }
 0x22b   :  { %v1180_v44 = vpop.f32.mrf.mxu3 }
 0x22c   :  { %v1057_v54 = vadd.f32 %v1056_v7, %v968_v51 }
 0x22e   :  { %v1117_v63 = vadd.f32 %v1116_v41, %v1057_v54 }
 0x230   :  { %v1181_v1 = vadd.f32 %v1180_v44, %v1117_v63 }
 0x231   :  { %v975_v10 = vpop.f32.mrf.mxu0  ;;  %v1064_v9 = vpop.f32.mrf.mxu1 }
 0x232   :  { %v1121_v25 = vpop.f32.mrf.mxu2  ;;  %v976_v19 = vadd.f32 %v1852_v15, %v975_v10 }
 0x233   :  { %v1186_v60 = vpop.f32.mrf.mxu3 }
 0x234   :  { %v1061_v2 = vadd.f32 %v1060_v40, %v976_v19 }
 0x236   :  { %v1122_v5 = vadd.f32 %v1121_v25, %v1061_v2 }
 0x238   :  { %v1187_v16 = vadd.f32 %v1186_v60, %v1122_v5 }
 0x239   :  { %v983_v56 = vpop.f32.mrf.mxu0  ;;  %v1068_v11 = vpop.f32.mrf.mxu1 }
 0x23a   :  { %v984_v36 = vadd.f32 %v1852_v15, %v983_v56  ;;  %v1126_v8 = vpop.f32.mrf.mxu2 }
 0x23b   :  { %v1192_v22 = vpop.f32.mrf.mxu3 }
 0x23c   :  { %v1065_v21 = vadd.f32 %v1064_v9, %v984_v36 }
 0x241   :  { %v991_v13 = vpop.f32.mrf.mxu0  ;;  %v1847_v14 = vpop.f32.mrf.mxu1 }
 0x242   :  { %v992_v43 = vadd.f32 %v1852_v15, %v991_v13  ;;  %v1131_v31 = vpop.f32.mrf.mxu2 }
 0x244   :  { %v1069_v47 = vadd.f32 %v1068_v11, %v992_v43 }
 0x249   :  { %v999_v20 = vpop.f32.mrf.mxu0  ;;  %v1854_v38 = vpop.f32.mrf.mxu1 }
 0x251   :  { %v1857_v29 = vpop.f32.mrf.mxu0  ;;  %v1296_v37 = vpop.f32.mrf.mxu1 }
 0x252   :  { %v1008_v11 = vadd.f32 %v1852_v15, %v1857_v29 }
 0x259   :  { %v1243_v42 = vpop.f32.mrf.mxu0  ;;  %v1300_v48 = vpop.f32.mrf.mxu1 }
 0x25a   :  { %v1244_v49 = vadd.f32 %v1243_v42, %v1169_v35  ;;  %v1198_v42 = vpop.f32.mrf.mxu3 }
 0x25c   :  { %v1297_v24 = vadd.f32 %v1296_v37, %v1244_v49  ;;  %v1127_v37 = vadd.f32 %v1126_v8, %v1065_v21  ;;  %v1000_v49 = vadd.f32 %v1852_v15, %v999_v20  ;;  %v1077_v20 = vadd.f32 %v1854_v38, %v1008_v11 }
 0x25e   :  { %1335 = vrot.lane.b32.xlu0 %v1297_v24, %s1439_s6  ;;  %v1193_v35 = vadd.f32 %v1192_v22, %v1127_v37  ;;  %v1073_v13 = vadd.f32 %v1847_v14, %v1000_v49  ;;  %v1136_v24 = vpop.f32.mrf.mxu2 }
 0x260   :  { %v1137_v54 = vadd.f32 %v1136_v24, %v1073_v13 }
 0x261   :  { %v1247_v55 = vpop.f32.mrf.mxu0  ;;  %v1304_v58 = vpop.f32.mrf.mxu1 }
 0x262   :  { %v1248_v62 = vadd.f32 %v1247_v55, %v1175_v53 }
 0x264   :  { %v1301_v45 = vadd.f32 %v1300_v48, %v1248_v62  ;;  %v1132_v48 = vadd.f32 %v1131_v31, %v1069_v47 }
 0x266   :  { %1337 = vrot.lane.b32.xlu0 %v1301_v45, %s1439_s6  ;;  %v1199_v51 = vadd.f32 %v1198_v42, %v1132_v48  ;;  %v1141_v45 = vpop.f32.mrf.mxu2 }
 0x267   :  { %v1142_v60 = vadd.f32 %v1141_v45, %v1077_v20 }
 0x269   :  { %v1251_v3 = vpop.f32.mrf.mxu0  ;;  %v1308_v32 = vpop.f32.mrf.mxu1 }
 0x26a   :  { %v1252_v12 = vadd.f32 %v1251_v3, %v1181_v1 }
 0x26c   :  { %v1305_v7 = vadd.f32 %v1304_v58, %v1252_v12  ;;  %v1204_v58 = vpop.f32.mrf.mxu3 }
 0x26d   :  { %v1205_v62 = vadd.f32 %v1204_v58, %v1137_v54 }
 0x26e   :  { %1339 = vrot.lane.b32.xlu1 %v1305_v7, %s1439_s6 }
 0x271   :  { %v1255_v10 = vpop.f32.mrf.mxu0  ;;  %v1312_v40 = vpop.f32.mrf.mxu1 }
 0x272   :  { %v1256_v28 = vadd.f32 %v1255_v10, %v1187_v16 }
 0x274   :  { %v1309_v30 = vadd.f32 %v1308_v32, %v1256_v28  ;;  %v1210_v1 = vpop.f32.mrf.mxu3 }
 0x275   :  { %v1211_v2 = vadd.f32 %v1210_v1, %v1142_v60 }
 0x276   :  { %1341 = vrot.lane.b32.xlu1 %v1309_v30, %s1439_s6 }
 0x279   :  { %v1259_v56 = vpop.f32.mrf.mxu0  ;;  %v1316_v50 = vpop.f32.mrf.mxu1 }
 0x27a   :  { %v1260_v41 = vadd.f32 %v1259_v56, %v1193_v35 }
 0x27c   :  { %v1313_v9 = vadd.f32 %v1312_v40, %v1260_v41 }
 0x27e   :  { %1343 = vrot.lane.b32.xlu2 %v1313_v9, %s1439_s6 }
 0x281   :  { %v1263_v44 = vpop.f32.mrf.mxu0  ;;  %v1320_v25 = vpop.f32.mrf.mxu1 }
 0x282   :  { %v1264_v53 = vadd.f32 %v1263_v44, %v1199_v51 }
 0x284   :  { %v1317_v55 = vadd.f32 %v1316_v50, %v1264_v53 }
 0x286   :  { %1345 = vrot.lane.b32.xlu2 %v1317_v55, %s1439_s6 }
 0x289   :  { %v1267_v63 = vpop.f32.mrf.mxu0  ;;  %v1324_v15 = vpop.f32.mrf.mxu1 }
 0x28a   :  { %v1268_v19 = vadd.f32 %v1267_v63, %v1205_v62 }
 0x28c   :  { %v1321_v14 = vadd.f32 %v1320_v25, %v1268_v19 }
 0x28e   :  { %1347 = vrot.lane.b32.xlu0 %v1321_v14, %s1439_s6 }
 0x291   :  { %v1271_v3 = vpop.f32.mrf.mxu0 }
 0x292   :  { %v1272_v12 = vadd.f32 %v1271_v3, %v1211_v2 }
 0x294   :  { %v1325_v29 = vadd.f32 %v1324_v15, %v1272_v12 }
 0x296   :  { %1349 = vrot.lane.b32.xlu1 %v1325_v29, %s1439_s6 }
 0x2d0   :  { %v1336_v32 = vpop.permute.xlu0 %1335 }
 0x2d1   :  { %v1359_v38 = vsel %vm458_vm1, %v885_v61, %v1336_v32 }
 0x2d2   :  { %v1368_v5 = vsel %vm1367_vm2, %v1359_v38, 0.0 }
 0x2d3   :  { %1376 = vst [vmem:[#allocation2] sm:$0xff] %v1368_v5 }
 0x2d8   :  { %v1344_v36 = vpop.permute.xlu2 %1343  ;;  %v1338_v7 = vpop.permute.xlu0 %1337 }
 0x2d9   :  { %v1363_v8 = vsel %vm458_vm1, %v889_v0, %v1344_v36  ;;  %v1360_v16 = vsel %vm458_vm1, %v886_v6, %v1338_v7 }
 0x2da   :  { %v1372_v21 = vsel %vm1367_vm2, %v1363_v8, 0.0  ;;  %v1369_v22 = vsel %vm1367_vm2, %v1360_v16, 0.0 }
 0x2db   :  { %1380 = vst [vmem:[#allocation2 + $0x20] sm:$0xff] %v1372_v21 }
 0x2dc   :  { %1377 = vst [vmem:[#allocation2 + $0x8] sm:$0xff] %v1369_v22 }
 0x2e0   :  { %v1346_v57 = vpop.permute.xlu2 %1345  ;;  %v1340_v61 = vpop.permute.xlu1 %1339 }
 0x2e1   :  { %v1364_v10 = vsel %vm458_vm1, %v890_v17, %v1346_v57  ;;  %v1361_v27 = vsel %vm458_vm1, %v887_v23, %v1340_v61 }
 0x2e2   :  { %v1373_v4 = vsel %vm1367_vm2, %v1364_v10, 0.0  ;;  %v1370_v6 = vsel %vm1367_vm2, %v1361_v27, 0.0 }
 0x2e3   :  { %1381 = vst [vmem:[#allocation2 + $0x28] sm:$0xff] %v1373_v4 }
 0x2e4   :  { %1378 = vst [vmem:[#allocation2 + $0x10] sm:$0xff] %v1370_v6 }
 0x2e8   :  { %v1342_v0 = vpop.permute.xlu1 %1341 }
 0x2e9   :  { %v1362_v28 = vsel %vm458_vm1, %v888_v52, %v1342_v0 }
 0x2ea   :  { %v1371_v37 = vsel %vm1367_vm2, %v1362_v28, 0.0 }
 0x2eb   :  { %1379 = vst [vmem:[#allocation2 + $0x18] sm:$0xff] %v1371_v37 }
 0x300   :  { %v1348_v33 = vpop.permute.xlu0 %1347 }
 0x301   :  { %v1365_v34 = vsel %vm458_vm1, %v891_v46, %v1348_v33 }
 0x302   :  { %v1374_v23 = vsel %vm1367_vm2, %v1365_v34, 0.0 }
 0x303   :  { %1382 = vst [vmem:[#allocation2 + $0x30] sm:$0xff] %v1374_v23 }
 0x308   :  { %v1350_v18 = vpop.permute.xlu1 %1349 }
 0x309   :  { %v1366_v52 = vsel %vm458_vm1, %v892_v59, %v1350_v18 }
 0x30a   :  { %v1375_v17 = vsel %vm1367_vm2, %v1366_v52, 0.0 }
 0x30b   :  { %1383 = vst [vmem:[#allocation2 + $0x38] sm:$0xff] %v1375_v17 }
 0x30c   :  { %1396 = dma.vmem_to_hbm [thread:$0]  %s1389_s14, 1024, %s1391_s17, [#allocation3], %s1441_s18, %s1441_s18, %s1442_s19  }
 0x30d   :  { %1437 = dma.done.wait [#allocation3], 1024  }
 0x30e   :  { %1438 = vsyncadd [#allocation3], 4294966272 }
 0x30f   :  { %1401 = vsyncpa [#allocation3], 1 }

</bundles_post_ra>
